<compile_context>
chip_gen: v5e
topology: v5e:2x2
jax: 0.10.0
libtpu: 0.0.40
codegen_flags: <defaults>
</compile_context>

<pallas_src>
import jax
import jax.numpy as jnp
from jax import lax
from jax.experimental import pallas as pl
from jax.experimental.pallas import tpu as pltpu


# ----------------------------- Pallas kernel --------------------------------

def decoder_kernel(
    x_emb_ref,   # (T, B, E)     embedded teacher-forcing inputs (SOS, y[:-1])
    enc_ref,     # (B, S, Denc)  encoder output
    wah_ref,     # (H, Denc)     attention projection, h half (pre-transposed)
    wac_ref,     # (H, Denc)     attention projection, c half
    batt_ref,    # (1, Denc)
    wx_ref,      # (4, E, H)     per-gate input->gate weights (order i,f,g,o)
    wctx_ref,    # (4, Denc, H)  per-gate context->gate weights
    whh_ref,     # (4, H, H)     per-gate hidden->gate weights
    bgate_ref,   # (4, 1, H)     per-gate bias (b_ih + b_hh)
    wout_ref,    # (H, V)        output head (pre-transposed)
    bout_ref,    # (1, V)
    h0_ref,      # (B, H)
    c0_ref,      # (B, H)
    out_ref,     # (T, B, V)
):
    T = x_emb_ref.shape[0]

    # Loop-invariant loads, hoisted out of the recurrence.
    enc = enc_ref[...]
    wah = wah_ref[...]
    wac = wac_ref[...]
    batt = batt_ref[...]
    wout = wout_ref[...]
    bout = bout_ref[...]

    def step(t, carry):
        h, c = carry

        # --- attention: query = Linear(cat([h, c])) as two MXU matmuls -----
        q = (jnp.dot(h, wah, preferred_element_type=jnp.float32)
             + jnp.dot(c, wac, preferred_element_type=jnp.float32)
             + batt)                                     # (B, Denc)
        q3 = q[:, None, :]                               # (B, 1, Denc)

        # Dot-product attention over S on the MXU (batched dot_general).
        scores = jnp.einsum("bqd,bsd->bqs", q3, enc,
                            preferred_element_type=jnp.float32)   # (B, 1, S)
        scores = scores - jnp.max(scores, axis=-1, keepdims=True)
        p = jnp.exp(scores)
        p = p * pl.reciprocal(jnp.sum(p, axis=-1, keepdims=True), approx=True)
        context = jnp.einsum("bqs,bsd->bqd", p, enc,
                             preferred_element_type=jnp.float32)[:, 0, :]  # (B, Denc)

        # --- LSTM cell: per-gate lane-aligned (B, H) blocks -----------------
        x_emb = x_emb_ref[t]                              # (B, E)

        def gate_pre(k):
            return (jnp.dot(x_emb, wx_ref[k], preferred_element_type=jnp.float32)
                    + jnp.dot(context, wctx_ref[k], preferred_element_type=jnp.float32)
                    + jnp.dot(h, whh_ref[k], preferred_element_type=jnp.float32)
                    + bgate_ref[k])

        i_g = jax.nn.sigmoid(gate_pre(0))
        f_g = jax.nn.sigmoid(gate_pre(1))
        g_g = jnp.tanh(gate_pre(2))
        o_g = jax.nn.sigmoid(gate_pre(3))

        c_new = f_g * c + i_g * g_g
        h_new = o_g * jnp.tanh(c_new)

        # --- output head (original module applies `out` to c, not h) -------
        y_pred = jnp.dot(c_new, wout, preferred_element_type=jnp.float32) + bout
        out_ref[t] = y_pred.astype(out_ref.dtype)         # store into VMEM output

        return (h_new, c_new)

    lax.fori_loop(0, T, step, (h0_ref[...], c0_ref[...]))


# ------------------------------- wrapper -------------------------------------

def decoder_forward(params, h0, c0, encoder_output, y, sos_value):
    """Runs the full decoder recurrence in a single grid-less Pallas call."""
    T, B = y.shape
    V, E = params["embed"].shape
    H = h0.shape[1]

    # Teacher forcing: step 0 consumes SOS, step i>0 consumes y[i-1].
    x_ids = jnp.concatenate(
        [jnp.full((1, B), sos_value, dtype=jnp.int32), y[:-1]], axis=0)  # (T, B)
    x_emb = params["embed"][x_ids].astype(jnp.float32)                   # (T, B, E)

    # Attention projection split so the kernel never concatenates [h, c].
    watt_t = params["W_att"].T            # (2H, Denc)
    wah, wac = watt_t[:H], watt_t[H:]     # (H, Denc) each
    batt = params["b_att"][None, :]       # (1, Denc)

    # LSTM weights split (a) along the input dim to avoid cat([x, context])
    # and (b) per gate (i, f, g, o) so each gate is its own lane-aligned tile.
    wih_t = params["W_ih"].T              # (E + Denc, 4H)
    whh_t = params["W_hh"].T              # (H, 4H)
    bias = params["b_ih"] + params["b_hh"]                                # (4H,)
    wx = jnp.stack([wih_t[:E, k * H:(k + 1) * H] for k in range(4)])      # (4, E, H)
    wctx = jnp.stack([wih_t[E:, k * H:(k + 1) * H] for k in range(4)])    # (4, Denc, H)
    whh = jnp.stack([whh_t[:, k * H:(k + 1) * H] for k in range(4)])      # (4, H, H)
    bgate = jnp.stack([bias[k * H:(k + 1) * H][None, :] for k in range(4)])  # (4, 1, H)

    wout = params["W_out"].T              # (H, V)
    bout = params["b_out"][None, :]       # (1, V)

    vmem = pl.BlockSpec(memory_space=pltpu.MemorySpace.VMEM)

    return pl.pallas_call(
        decoder_kernel,
        out_shape=jax.ShapeDtypeStruct((T, B, V), jnp.float32),
        in_specs=[vmem] * 13,
        out_specs=vmem,
    )(x_emb, encoder_output.astype(jnp.float32), wah, wac, batt,
      wx, wctx, whh, bgate, wout, bout, h0, c0)


# ------------------------- pure-JAX reference --------------------------------

def decoder_reference(params, h0, c0, encoder_output, y, sos_value):
    T, B = y.shape
    h, c = h0, c0
    x_ids = jnp.full((B,), sos_value, dtype=jnp.int32)
    preds = []
    for i in range(T):
        hc = jnp.concatenate([h, c], axis=1)
        q = hc @ params["W_att"].T + params["b_att"]
        scores = jnp.einsum("bd,bsd->bs", q, encoder_output)
        w = jax.nn.softmax(scores, axis=1)
        context = jnp.einsum("bs,bsd->bd", w, encoder_output)
        x_emb = params["embed"][x_ids]
        x_cat = jnp.concatenate([x_emb, context], axis=1)
        gates = (x_cat @ params["W_ih"].T + params["b_ih"]
                 + h @ params["W_hh"].T + params["b_hh"])
        H = h.shape[1]
        i_g = jax.nn.sigmoid(gates[:, :H])
        f_g = jax.nn.sigmoid(gates[:, H:2 * H])
        g_g = jnp.tanh(gates[:, 2 * H:3 * H])
        o_g = jax.nn.sigmoid(gates[:, 3 * H:])
        c = f_g * c + i_g * g_g
        h = o_g * jnp.tanh(c)
        preds.append(c @ params["W_out"].T + params["b_out"])
        x_ids = y[i]
    return jnp.stack(preds)


# --------------------------------- main ---------------------------------------

if __name__ == "__main__":
    # Small, shape-consistent config.
    B, T, S = 2, 8, 8          # batch, decode steps, encoder length
    V, E = 32, 16              # vocab (num_embeddings), embedding dim
    H, Denc = 32, 16           # hidden size, encoder feature dim
    IN = E + Denc              # LSTMCell input_size
    SOS = 1

    key = jax.random.PRNGKey(0)
    ks = jax.random.split(key, 12)

    params = {
        "embed": jax.random.normal(ks[0], (V, E), jnp.float32) * 0.1,
        "W_att": jax.random.normal(ks[1], (Denc, 2 * H), jnp.float32) * 0.1,
        "b_att": jax.random.normal(ks[2], (Denc,), jnp.float32) * 0.1,
        "W_ih": jax.random.normal(ks[3], (4 * H, IN), jnp.float32) * 0.1,
        "W_hh": jax.random.normal(ks[4], (4 * H, H), jnp.float32) * 0.1,
        "b_ih": jax.random.normal(ks[5], (4 * H,), jnp.float32) * 0.1,
        "b_hh": jax.random.normal(ks[6], (4 * H,), jnp.float32) * 0.1,
        "W_out": jax.random.normal(ks[7], (V, H), jnp.float32) * 0.1,
        "b_out": jax.random.normal(ks[8], (V,), jnp.float32) * 0.1,
    }

    h0 = jax.random.normal(ks[9], (B, H), jnp.float32) * 0.1
    c0 = jax.random.normal(ks[10], (B, H), jnp.float32) * 0.1
    encoder_output = jax.random.normal(ks[11], (B, S, Denc), jnp.float32)
    y = jax.random.randint(jax.random.PRNGKey(42), (T, B), 0, V, dtype=jnp.int32)

    out = decoder_forward(params, h0, c0, encoder_output, y, SOS)
    out = jax.block_until_ready(out)

    ref = decoder_reference(params, h0, c0, encoder_output, y, SOS)
    assert out.shape == (T, B, V), out.shape
    # approx=True softmax reciprocal -> allow small numeric drift.
    assert jnp.allclose(out, ref, rtol=3e-3, atol=3e-3), (
        float(jnp.max(jnp.abs(out - ref))))

    print("KERNEL_OK")
</pallas_src>

<mosaic_0001>
module attributes {stable_mosaic.version = 11 : i64} {
  func.func @decoder_kernel(%arg0: memref<8x2x16xf32, #tpu.memory_space<vmem>>, %arg1: memref<2x8x16xf32, #tpu.memory_space<vmem>>, %arg2: memref<32x16xf32, #tpu.memory_space<vmem>>, %arg3: memref<32x16xf32, #tpu.memory_space<vmem>>, %arg4: memref<1x16xf32, #tpu.memory_space<vmem>>, %arg5: memref<4x16x32xf32, #tpu.memory_space<vmem>>, %arg6: memref<4x16x32xf32, #tpu.memory_space<vmem>>, %arg7: memref<4x32x32xf32, #tpu.memory_space<vmem>>, %arg8: memref<4x1x32xf32, #tpu.memory_space<vmem>>, %arg9: memref<32x32xf32, #tpu.memory_space<vmem>>, %arg10: memref<1x32xf32, #tpu.memory_space<vmem>>, %arg11: memref<2x32xf32, #tpu.memory_space<vmem>>, %arg12: memref<2x32xf32, #tpu.memory_space<vmem>>, %arg13: memref<8x2x32xf32, #tpu.memory_space<vmem>>) attributes {dimension_semantics = [], scalar_prefetch = 0 : i64, scratch_operands = 0 : i64, tpu.core_type = #tpu.core_type<tc>} {
    %c0 = arith.constant 0 : index
    %c0_0 = arith.constant 0 : index
    %c0_1 = arith.constant 0 : index
    %0 = vector.load %arg1[%c0, %c0_0, %c0_1] : memref<2x8x16xf32, #tpu.memory_space<vmem>>, vector<2x8x16xf32>
    %c0_2 = arith.constant 0 : index
    %c0_3 = arith.constant 0 : index
    %1 = vector.load %arg2[%c0_2, %c0_3] : memref<32x16xf32, #tpu.memory_space<vmem>>, vector<32x16xf32>
    %c0_4 = arith.constant 0 : index
    %c0_5 = arith.constant 0 : index
    %2 = vector.load %arg3[%c0_4, %c0_5] : memref<32x16xf32, #tpu.memory_space<vmem>>, vector<32x16xf32>
    %c0_6 = arith.constant 0 : index
    %c0_7 = arith.constant 0 : index
    %3 = vector.load %arg4[%c0_6, %c0_7] : memref<1x16xf32, #tpu.memory_space<vmem>>, vector<1x16xf32>
    %c0_8 = arith.constant 0 : index
    %c0_9 = arith.constant 0 : index
    %4 = vector.load %arg9[%c0_8, %c0_9] : memref<32x32xf32, #tpu.memory_space<vmem>>, vector<32x32xf32>
    %c0_10 = arith.constant 0 : index
    %c0_11 = arith.constant 0 : index
    %5 = vector.load %arg10[%c0_10, %c0_11] : memref<1x32xf32, #tpu.memory_space<vmem>>, vector<1x32xf32>
    %c0_12 = arith.constant 0 : index
    %c0_13 = arith.constant 0 : index
    %6 = vector.load %arg11[%c0_12, %c0_13] : memref<2x32xf32, #tpu.memory_space<vmem>>, vector<2x32xf32>
    %c0_14 = arith.constant 0 : index
    %c0_15 = arith.constant 0 : index
    %7 = vector.load %arg12[%c0_14, %c0_15] : memref<2x32xf32, #tpu.memory_space<vmem>>, vector<2x32xf32>
    %c0_i32 = arith.constant 0 : i32
    %c8_i32 = arith.constant 8 : i32
    %8 = arith.addi %c0_i32, %c8_i32 : i32
    %c1_i32 = arith.constant 1 : i32
    %9:2 = scf.for %arg14 = %c0_i32 to %8 step %c1_i32 iter_args(%arg15 = %6, %arg16 = %7) -> (vector<2x32xf32>, vector<2x32xf32>)  : i32 {
      %cst = arith.constant dense<0.000000e+00> : vector<2x16xf32>
      %10 = tpu.matmul %arg15, %1, %cst {dimension_numbers = #tpu.dot_dimension_numbers<[1], [0], [0], [1], [0, 0, 1, 1], [], []>} : vector<2x32xf32>, vector<32x16xf32>, vector<2x16xf32> -> vector<2x16xf32>
      %cst_17 = arith.constant dense<0.000000e+00> : vector<2x16xf32>
      %11 = tpu.matmul %arg16, %2, %cst_17 {dimension_numbers = #tpu.dot_dimension_numbers<[1], [0], [0], [1], [0, 0, 1, 1], [], []>} : vector<2x32xf32>, vector<32x16xf32>, vector<2x16xf32> -> vector<2x16xf32>
      %12 = arith.addf %10, %11 : vector<2x16xf32>
      %13 = vector.broadcast %3 : vector<1x16xf32> to vector<2x16xf32>
      %14 = arith.addf %12, %13 : vector<2x16xf32>
      %15 = vector.shape_cast %14 : vector<2x16xf32> to vector<2x1x16xf32>
      "tpu.trace_start"() <{level = 10 : i32, message = "bqd,bsd->bqs"}> : () -> ()
      %cst_18 = arith.constant dense<0.000000e+00> : vector<2x1x8xf32>
      %16 = tpu.matmul %15, %0, %cst_18 {dimension_numbers = #tpu.dot_dimension_numbers<[2], [2], [1], [1], [0, 0, 0, 1, 1, 1], [0], [0]>} : vector<2x1x16xf32>, vector<2x8x16xf32>, vector<2x1x8xf32> -> vector<2x1x8xf32>
      "tpu.trace_stop"() : () -> ()
      %cst_19 = arith.constant dense<0xFF800000> : vector<2x1xf32>
      %17 = vector.multi_reduction <maximumf>, %16, %cst_19 [2] : vector<2x1x8xf32> to vector<2x1xf32>
      %18 = vector.shape_cast %17 : vector<2x1xf32> to vector<2x1x1xf32>
      %19 = vector.broadcast %18 : vector<2x1x1xf32> to vector<2x1x8xf32>
      %20 = arith.subf %16, %19 : vector<2x1x8xf32>
      %21 = math.exp %20 : vector<2x1x8xf32>
      %cst_20 = arith.constant dense<0.000000e+00> : vector<2x1xf32>
      %22 = vector.multi_reduction <add>, %21, %cst_20 [2] : vector<2x1x8xf32> to vector<2x1xf32>
      %23 = vector.shape_cast %22 : vector<2x1xf32> to vector<2x1x1xf32>
      %24 = tpu.reciprocal %23 {approx = true} : vector<2x1x1xf32> -> vector<2x1x1xf32>
      %25 = vector.broadcast %24 : vector<2x1x1xf32> to vector<2x1x8xf32>
      %26 = arith.mulf %21, %25 : vector<2x1x8xf32>
      "tpu.trace_start"() <{level = 10 : i32, message = "bqs,bsd->bqd"}> : () -> ()
      %cst_21 = arith.constant dense<0.000000e+00> : vector<2x1x16xf32>
      %27 = tpu.matmul %26, %0, %cst_21 {dimension_numbers = #tpu.dot_dimension_numbers<[2], [1], [1], [2], [0, 0, 0, 1, 1, 2], [0], [0]>} : vector<2x1x8xf32>, vector<2x8x16xf32>, vector<2x1x16xf32> -> vector<2x1x16xf32>
      "tpu.trace_stop"() : () -> ()
      %28 = vector.shape_cast %27 : vector<2x1x16xf32> to vector<2x16xf32>
      %29 = arith.index_cast %arg14 : i32 to index
      %c0_22 = arith.constant 0 : index
      %c0_23 = arith.constant 0 : index
      %30 = vector.load %arg0[%29, %c0_22, %c0_23] : memref<8x2x16xf32, #tpu.memory_space<vmem>>, vector<1x2x16xf32>
      %31 = vector.shape_cast %30 : vector<1x2x16xf32> to vector<2x16xf32>
      %c0_24 = arith.constant 0 : index
      %c0_25 = arith.constant 0 : index
      %c0_26 = arith.constant 0 : index
      %32 = vector.load %arg5[%c0_24, %c0_25, %c0_26] : memref<4x16x32xf32, #tpu.memory_space<vmem>>, vector<1x16x32xf32>
      %33 = vector.shape_cast %32 : vector<1x16x32xf32> to vector<16x32xf32>
      %cst_27 = arith.constant dense<0.000000e+00> : vector<2x32xf32>
      %34 = tpu.matmul %31, %33, %cst_27 {dimension_numbers = #tpu.dot_dimension_numbers<[1], [0], [0], [1], [0, 0, 1, 1], [], []>} : vector<2x16xf32>, vector<16x32xf32>, vector<2x32xf32> -> vector<2x32xf32>
      %c0_28 = arith.constant 0 : index
      %c0_29 = arith.constant 0 : index
      %c0_30 = arith.constant 0 : index
      %35 = vector.load %arg6[%c0_28, %c0_29, %c0_30] : memref<4x16x32xf32, #tpu.memory_space<vmem>>, vector<1x16x32xf32>
      %36 = vector.shape_cast %35 : vector<1x16x32xf32> to vector<16x32xf32>
      %cst_31 = arith.constant dense<0.000000e+00> : vector<2x32xf32>
      %37 = tpu.matmul %28, %36, %cst_31 {dimension_numbers = #tpu.dot_dimension_numbers<[1], [0], [0], [1], [0, 0, 1, 1], [], []>} : vector<2x16xf32>, vector<16x32xf32>, vector<2x32xf32> -> vector<2x32xf32>
      %38 = arith.addf %34, %37 : vector<2x32xf32>
      %c0_32 = arith.constant 0 : index
      %c0_33 = arith.constant 0 : index
      %c0_34 = arith.constant 0 : index
      %39 = vector.load %arg7[%c0_32, %c0_33, %c0_34] : memref<4x32x32xf32, #tpu.memory_space<vmem>>, vector<1x32x32xf32>
      %40 = vector.shape_cast %39 : vector<1x32x32xf32> to vector<32x32xf32>
      %cst_35 = arith.constant dense<0.000000e+00> : vector<2x32xf32>
      %41 = tpu.matmul %arg15, %40, %cst_35 {dimension_numbers = #tpu.dot_dimension_numbers<[1], [0], [0], [1], [0, 0, 1, 1], [], []>} : vector<2x32xf32>, vector<32x32xf32>, vector<2x32xf32> -> vector<2x32xf32>
      %42 = arith.addf %38, %41 : vector<2x32xf32>
      %c0_36 = arith.constant 0 : index
      %c0_37 = arith.constant 0 : index
      %c0_38 = arith.constant 0 : index
      %43 = vector.load %arg8[%c0_36, %c0_37, %c0_38] : memref<4x1x32xf32, #tpu.memory_space<vmem>>, vector<1x1x32xf32>
      %44 = vector.shape_cast %43 : vector<1x1x32xf32> to vector<1x32xf32>
      %45 = vector.broadcast %44 : vector<1x32xf32> to vector<2x32xf32>
      %46 = arith.addf %42, %45 : vector<2x32xf32>
      %47 = arith.negf %46 : vector<2x32xf32>
      %48 = math.exp %47 : vector<2x32xf32>
      %cst_39 = arith.constant 1.000000e+00 : f32
      %49 = vector.broadcast %cst_39 : f32 to vector<2x32xf32>
      %50 = arith.addf %49, %48 : vector<2x32xf32>
      %51 = arith.divf %49, %50 : vector<2x32xf32>
      %c1 = arith.constant 1 : index
      %c0_40 = arith.constant 0 : index
      %c0_41 = arith.constant 0 : index
      %52 = vector.load %arg5[%c1, %c0_40, %c0_41] : memref<4x16x32xf32, #tpu.memory_space<vmem>>, vector<1x16x32xf32>
      %53 = vector.shape_cast %52 : vector<1x16x32xf32> to vector<16x32xf32>
      %cst_42 = arith.constant dense<0.000000e+00> : vector<2x32xf32>
      %54 = tpu.matmul %31, %53, %cst_42 {dimension_numbers = #tpu.dot_dimension_numbers<[1], [0], [0], [1], [0, 0, 1, 1], [], []>} : vector<2x16xf32>, vector<16x32xf32>, vector<2x32xf32> -> vector<2x32xf32>
      %c1_43 = arith.constant 1 : index
      %c0_44 = arith.constant 0 : index
      %c0_45 = arith.constant 0 : index
      %55 = vector.load %arg6[%c1_43, %c0_44, %c0_45] : memref<4x16x32xf32, #tpu.memory_space<vmem>>, vector<1x16x32xf32>
      %56 = vector.shape_cast %55 : vector<1x16x32xf32> to vector<16x32xf32>
      %cst_46 = arith.constant dense<0.000000e+00> : vector<2x32xf32>
      %57 = tpu.matmul %28, %56, %cst_46 {dimension_numbers = #tpu.dot_dimension_numbers<[1], [0], [0], [1], [0, 0, 1, 1], [], []>} : vector<2x16xf32>, vector<16x32xf32>, vector<2x32xf32> -> vector<2x32xf32>
      %58 = arith.addf %54, %57 : vector<2x32xf32>
      %c1_47 = arith.constant 1 : index
      %c0_48 = arith.constant 0 : index
      %c0_49 = arith.constant 0 : index
      %59 = vector.load %arg7[%c1_47, %c0_48, %c0_49] : memref<4x32x32xf32, #tpu.memory_space<vmem>>, vector<1x32x32xf32>
      %60 = vector.shape_cast %59 : vector<1x32x32xf32> to vector<32x32xf32>
      %cst_50 = arith.constant dense<0.000000e+00> : vector<2x32xf32>
      %61 = tpu.matmul %arg15, %60, %cst_50 {dimension_numbers = #tpu.dot_dimension_numbers<[1], [0], [0], [1], [0, 0, 1, 1], [], []>} : vector<2x32xf32>, vector<32x32xf32>, vector<2x32xf32> -> vector<2x32xf32>
      %62 = arith.addf %58, %61 : vector<2x32xf32>
      %c1_51 = arith.constant 1 : index
      %c0_52 = arith.constant 0 : index
      %c0_53 = arith.constant 0 : index
      %63 = vector.load %arg8[%c1_51, %c0_52, %c0_53] : memref<4x1x32xf32, #tpu.memory_space<vmem>>, vector<1x1x32xf32>
      %64 = vector.shape_cast %63 : vector<1x1x32xf32> to vector<1x32xf32>
      %65 = vector.broadcast %64 : vector<1x32xf32> to vector<2x32xf32>
      %66 = arith.addf %62, %65 : vector<2x32xf32>
      %67 = arith.negf %66 : vector<2x32xf32>
      %68 = math.exp %67 : vector<2x32xf32>
      %cst_54 = arith.constant 1.000000e+00 : f32
      %69 = vector.broadcast %cst_54 : f32 to vector<2x32xf32>
      %70 = arith.addf %69, %68 : vector<2x32xf32>
      %71 = arith.divf %69, %70 : vector<2x32xf32>
      %c2 = arith.constant 2 : index
      %c0_55 = arith.constant 0 : index
      %c0_56 = arith.constant 0 : index
      %72 = vector.load %arg5[%c2, %c0_55, %c0_56] : memref<4x16x32xf32, #tpu.memory_space<vmem>>, vector<1x16x32xf32>
      %73 = vector.shape_cast %72 : vector<1x16x32xf32> to vector<16x32xf32>
      %cst_57 = arith.constant dense<0.000000e+00> : vector<2x32xf32>
      %74 = tpu.matmul %31, %73, %cst_57 {dimension_numbers = #tpu.dot_dimension_numbers<[1], [0], [0], [1], [0, 0, 1, 1], [], []>} : vector<2x16xf32>, vector<16x32xf32>, vector<2x32xf32> -> vector<2x32xf32>
      %c2_58 = arith.constant 2 : index
      %c0_59 = arith.constant 0 : index
      %c0_60 = arith.constant 0 : index
      %75 = vector.load %arg6[%c2_58, %c0_59, %c0_60] : memref<4x16x32xf32, #tpu.memory_space<vmem>>, vector<1x16x32xf32>
      %76 = vector.shape_cast %75 : vector<1x16x32xf32> to vector<16x32xf32>
      %cst_61 = arith.constant dense<0.000000e+00> : vector<2x32xf32>
      %77 = tpu.matmul %28, %76, %cst_61 {dimension_numbers = #tpu.dot_dimension_numbers<[1], [0], [0], [1], [0, 0, 1, 1], [], []>} : vector<2x16xf32>, vector<16x32xf32>, vector<2x32xf32> -> vector<2x32xf32>
      %78 = arith.addf %74, %77 : vector<2x32xf32>
      %c2_62 = arith.constant 2 : index
      %c0_63 = arith.constant 0 : index
      %c0_64 = arith.constant 0 : index
      %79 = vector.load %arg7[%c2_62, %c0_63, %c0_64] : memref<4x32x32xf32, #tpu.memory_space<vmem>>, vector<1x32x32xf32>
      %80 = vector.shape_cast %79 : vector<1x32x32xf32> to vector<32x32xf32>
      %cst_65 = arith.constant dense<0.000000e+00> : vector<2x32xf32>
      %81 = tpu.matmul %arg15, %80, %cst_65 {dimension_numbers = #tpu.dot_dimension_numbers<[1], [0], [0], [1], [0, 0, 1, 1], [], []>} : vector<2x32xf32>, vector<32x32xf32>, vector<2x32xf32> -> vector<2x32xf32>
      %82 = arith.addf %78, %81 : vector<2x32xf32>
      %c2_66 = arith.constant 2 : index
      %c0_67 = arith.constant 0 : index
      %c0_68 = arith.constant 0 : index
      %83 = vector.load %arg8[%c2_66, %c0_67, %c0_68] : memref<4x1x32xf32, #tpu.memory_space<vmem>>, vector<1x1x32xf32>
      %84 = vector.shape_cast %83 : vector<1x1x32xf32> to vector<1x32xf32>
      %85 = vector.broadcast %84 : vector<1x32xf32> to vector<2x32xf32>
      %86 = arith.addf %82, %85 : vector<2x32xf32>
      %87 = math.tanh %86 : vector<2x32xf32>
      %c3 = arith.constant 3 : index
      %c0_69 = arith.constant 0 : index
      %c0_70 = arith.constant 0 : index
      %88 = vector.load %arg5[%c3, %c0_69, %c0_70] : memref<4x16x32xf32, #tpu.memory_space<vmem>>, vector<1x16x32xf32>
      %89 = vector.shape_cast %88 : vector<1x16x32xf32> to vector<16x32xf32>
      %cst_71 = arith.constant dense<0.000000e+00> : vector<2x32xf32>
      %90 = tpu.matmul %31, %89, %cst_71 {dimension_numbers = #tpu.dot_dimension_numbers<[1], [0], [0], [1], [0, 0, 1, 1], [], []>} : vector<2x16xf32>, vector<16x32xf32>, vector<2x32xf32> -> vector<2x32xf32>
      %c3_72 = arith.constant 3 : index
      %c0_73 = arith.constant 0 : index
      %c0_74 = arith.constant 0 : index
      %91 = vector.load %arg6[%c3_72, %c0_73, %c0_74] : memref<4x16x32xf32, #tpu.memory_space<vmem>>, vector<1x16x32xf32>
      %92 = vector.shape_cast %91 : vector<1x16x32xf32> to vector<16x32xf32>
      %cst_75 = arith.constant dense<0.000000e+00> : vector<2x32xf32>
      %93 = tpu.matmul %28, %92, %cst_75 {dimension_numbers = #tpu.dot_dimension_numbers<[1], [0], [0], [1], [0, 0, 1, 1], [], []>} : vector<2x16xf32>, vector<16x32xf32>, vector<2x32xf32> -> vector<2x32xf32>
      %94 = arith.addf %90, %93 : vector<2x32xf32>
      %c3_76 = arith.constant 3 : index
      %c0_77 = arith.constant 0 : index
      %c0_78 = arith.constant 0 : index
      %95 = vector.load %arg7[%c3_76, %c0_77, %c0_78] : memref<4x32x32xf32, #tpu.memory_space<vmem>>, vector<1x32x32xf32>
      %96 = vector.shape_cast %95 : vector<1x32x32xf32> to vector<32x32xf32>
      %cst_79 = arith.constant dense<0.000000e+00> : vector<2x32xf32>
      %97 = tpu.matmul %arg15, %96, %cst_79 {dimension_numbers = #tpu.dot_dimension_numbers<[1], [0], [0], [1], [0, 0, 1, 1], [], []>} : vector<2x32xf32>, vector<32x32xf32>, vector<2x32xf32> -> vector<2x32xf32>
      %98 = arith.addf %94, %97 : vector<2x32xf32>
      %c3_80 = arith.constant 3 : index
      %c0_81 = arith.constant 0 : index
      %c0_82 = arith.constant 0 : index
      %99 = vector.load %arg8[%c3_80, %c0_81, %c0_82] : memref<4x1x32xf32, #tpu.memory_space<vmem>>, vector<1x1x32xf32>
      %100 = vector.shape_cast %99 : vector<1x1x32xf32> to vector<1x32xf32>
      %101 = vector.broadcast %100 : vector<1x32xf32> to vector<2x32xf32>
      %102 = arith.addf %98, %101 : vector<2x32xf32>
      %103 = arith.negf %102 : vector<2x32xf32>
      %104 = math.exp %103 : vector<2x32xf32>
      %cst_83 = arith.constant 1.000000e+00 : f32
      %105 = vector.broadcast %cst_83 : f32 to vector<2x32xf32>
      %106 = arith.addf %105, %104 : vector<2x32xf32>
      %107 = arith.divf %105, %106 : vector<2x32xf32>
      %108 = arith.mulf %71, %arg16 : vector<2x32xf32>
      %109 = arith.mulf %51, %87 : vector<2x32xf32>
      %110 = arith.addf %108, %109 : vector<2x32xf32>
      %111 = math.tanh %110 : vector<2x32xf32>
      %112 = arith.mulf %107, %111 : vector<2x32xf32>
      %cst_84 = arith.constant dense<0.000000e+00> : vector<2x32xf32>
      %113 = tpu.matmul %110, %4, %cst_84 {dimension_numbers = #tpu.dot_dimension_numbers<[1], [0], [0], [1], [0, 0, 1, 1], [], []>} : vector<2x32xf32>, vector<32x32xf32>, vector<2x32xf32> -> vector<2x32xf32>
      %114 = vector.broadcast %5 : vector<1x32xf32> to vector<2x32xf32>
      %115 = arith.addf %113, %114 : vector<2x32xf32>
      %116 = arith.index_cast %arg14 : i32 to index
      %c0_85 = arith.constant 0 : index
      %c0_86 = arith.constant 0 : index
      %117 = vector.load %arg13[%116, %c0_85, %c0_86] : memref<8x2x32xf32, #tpu.memory_space<vmem>>, vector<1x2x32xf32>
      %118 = vector.shape_cast %117 : vector<1x2x32xf32> to vector<2x32xf32>
      %119 = vector.shape_cast %115 : vector<2x32xf32> to vector<1x2x32xf32>
      tpu.vector_store %arg13[%116, %c0_85, %c0_86], %119 {strides = array<i32>} : memref<8x2x32xf32, #tpu.memory_space<vmem>>, vector<1x2x32xf32>,
      scf.yield %112, %110 : vector<2x32xf32>, vector<2x32xf32>
    }
    %c8_i32_16 = arith.constant 8 : i32
    return
  }
}

</mosaic_0001>

<bundles_post_ra>
// kernel: tpu_custom_call.1
= control target key start
LH: loop header
LB: loop body
LE: loop exit
PB: predicated region body
PF: predicated region fallthrough
CT: control target
= control target key end

     0   :  { %18 = vsyncpa [#allocation3], 0  ;;  %s1325_s0 = inlined_call_operand.vmem [shape: f32[8,2,16], index: 0, kind: input, shape index: {}]   ;;  %s1326_s1 = inlined_call_operand.hbm [shape: f32[2,8,16], index: 1, kind: input, shape index: {}]   ;;  %s1327_s2 = inlined_call_operand.vmem [shape: f32[32,16], index: 2, kind: input, shape index: {}]   ;;  %s1328_s3 = inlined_call_operand.vmem [shape: f32[32,16], index: 3, kind: input, shape index: {}]   ;;  %s1329_s4 = inlined_call_operand.vmem [shape: f32[1,16], index: 4, kind: input, shape index: {}]   ;;  %s1330_s5 = inlined_call_operand.vmem [shape: f32[4,16,32], index: 5, kind: input, shape index: {}]   ;;  %s1331_s6 = inlined_call_operand.hbm [shape: f32[4,16,32], index: 6, kind: input, shape index: {}]   ;;  %s1332_s7 = inlined_call_operand.hbm [shape: f32[4,32,32], index: 7, kind: input, shape index: {}]   ;;  %s1333_s8 = inlined_call_operand.vmem [shape: f32[4,1,32], index: 8, kind: input, shape index: {}]   ;;  %s1334_s9 = inlined_call_operand.hbm [shape: f32[32,32], index: 9, kind: input, shape index: {}]   ;;  %s1335_s10 = inlined_call_operand.hbm [shape: f32[1,32], index: 10, kind: input, shape index: {}]   ;;  %s1336_s11 = inlined_call_operand.vmem [shape: f32[2,32], index: 11, kind: input, shape index: {}]   ;;  %s1337_s12 = inlined_call_operand.vmem [shape: f32[2,32], index: 12, kind: input, shape index: {}]   ;;  %s1338_s13 = inlined_call_operand.hbm [shape: f32[8,2,32], index: 13, kind: output, shape index: {}]  }
   0x1   :  { %19 = vsyncpa [#allocation6], 0 }
   0x2   :  { %20 = vsyncpa [#allocation9], 0 }
   0x3   :  { %21 = vsyncpa [#allocation4], 0  ;;  %s49_s27 = sshll.u32 %s1331_s6, 4  ;;  %s1042_s28 = smov [#allocation5]   ;;  %s50_s27 = int_to_ptr.hbm [resolvable:$true] %s49_s27 }
   0x4   :  { %s51_s29 = sshll.u32 %s1042_s28, 4  ;;  %s77_s15 = sshll.u32 %s1334_s9, 4  ;;  %s52_s29 = int_to_ptr.vmem [resolvable:$true] %s51_s29  ;;  %s78_s15 = int_to_ptr.hbm [resolvable:$true] %s77_s15 }
   0x5   :  { %s1043_s16 = smov 128   ;;  %s1044_s17 = smov 8  }
   0x6   :  { %57 = dma.hbm_to_vmem [thread:$0]  %s50_s27, 1024, %s52_s29, [#allocation6], %s1043_s16, %s1043_s16, %s1044_s17  }
   0x7   :  { %s1045_s18 = smov [#allocation8]   ;;  %s28_s22 = sshll.u32 %s1326_s1, 4  ;;  %s29_s22 = int_to_ptr.hbm [resolvable:$true] %s28_s22 }
   0x8   :  { %s79_s19 = sshll.u32 %s1045_s18, 4  ;;  %s62_s24 = sshll.u32 %s1332_s7, 4  ;;  %s80_s19 = int_to_ptr.vmem [resolvable:$true] %s79_s19  ;;  %s63_s24 = int_to_ptr.hbm [resolvable:$true] %s62_s24 }
   0x9   :  { %85 = dma.hbm_to_vmem [thread:$0]  %s78_s15, 512, %s80_s19, [#allocation9], %s1043_s16, %s1043_s16, %s1044_s17  }
   0xa   :  { %s1046_s25 = smov [#allocation2]   ;;  %s1047_s9 = smov [#allocation7]  }
   0xb   :  { %s30_s26 = sshll.u32 %s1046_s25, 4  ;;  %s64_s27 = sshll.u32 %s1047_s9, 4  ;;  %s31_s26 = int_to_ptr.vmem [resolvable:$true] %s30_s26  ;;  %s65_s27 = int_to_ptr.vmem [resolvable:$true] %s64_s27 }
   0xc   :  { %36 = dma.hbm_to_vmem [thread:$0]  %s29_s22, 256, %s31_s26, [#allocation3], %s1043_s16, %s1043_s16, %s1044_s17  }
   0xd   :  { %s91_s30 = sshll.u32 %s1335_s10, 4  ;;  %s1048_s1 = smov [#allocation10]   ;;  %s92_s30 = int_to_ptr.hbm [resolvable:$true] %s91_s30 }
   0xe   :  { %70 = dma.hbm_to_vmem [thread:$0]  %s63_s24, 2048, %s65_s27, [#allocation6], %s1043_s16, %s1043_s16, %s1044_s17  }
   0xf   :  { %s93_s14 = sshll.u32 %s1048_s1, 4  ;;  %s94_s14 = int_to_ptr.vmem [resolvable:$true] %s93_s14 }
  0x10   :  { %96 = dma.hbm_to_vmem [thread:$0]  %s92_s30, 16, %s94_s14, [#allocation9]  }
  0x11   :  { %1022 = dma.done.wait [#allocation3], 256  }
  0x12   :  { %1023 = vsyncadd [#allocation3], 4294967040 }
  0x13   :  { %1024 = dma.done.wait [#allocation6], 3072  }
  0x14   :  { %1025 = vsyncadd [#allocation6], 4294964224 }
  0x15   :  { %1026 = dma.done.wait [#allocation9], 528  }
  0x16   :  { %1027 = vsyncadd [#allocation9], 4294966768  ;;  %v1137_v0 = vld [vmem:[#allocation2] sm:$0xff]  ;;  %v1139_v1 = vld [vmem:[#allocation2 + $0x8] sm:$0xff] }
  0x17   :  { %v1144_v2 = vld [vmem:[%s1327_s2] sm:$0xff]  ;;  %v1149_v3 = vld [vmem:[%s1327_s2 + $0x8] sm:$0xff]  ;;  %v1154_v4 = vld [vmem:[%s1327_s2 + $0x10] sm:$0xff] }
  0x18   :  { %v1159_v5 = vld [vmem:[%s1327_s2 + $0x18] sm:$0xff]  ;;  %v1164_v6 = vld [vmem:[%s1328_s3] sm:$0xff]  ;;  %v1169_v7 = vld [vmem:[%s1328_s3 + $0x8] sm:$0xff] }
  0x19   :  { %v1174_v8 = vld [vmem:[%s1328_s3 + $0x10] sm:$0xff]  ;;  %v1179_v9 = vld [vmem:[%s1328_s3 + $0x18] sm:$0xff]  ;;  %v1184_v10 = vld [vmem:[%s1329_s4] sm:$0x1]  ;;  %s1206_s4 = smov 0  }
  0x1a   :  { %v1186_v11 = vld [vmem:[#allocation8] sm:$0xff]  ;;  %v1188_v12 = vld [vmem:[#allocation8 + $0x8] sm:$0xff]  ;;  %v1190_v13 = vld [vmem:[#allocation8 + $0x10] sm:$0xff] }
  0x1b   :  { %v1192_v14 = vld [vmem:[#allocation8 + $0x18] sm:$0xff]  ;;  %v1194_v15 = vld [vmem:[#allocation10] sm:$0x1]  ;;  %v137_v16 = vld [vmem:[%s1336_s11] sm:$0x3]  }
  0x1c   :  { %v138_v17 = vld [vmem:[%s1337_s12] sm:$0x3]  }
  0x1d LB: > { %163 = vmatpush.msra.mxu0 %v1179_v9  ;;  %186 = vmatpush.msra.mxu1 %v1159_v5  ;;  %vm147_vm0 = vcmask 261120   ;;  %vm200_vm1 = vcmask 130048   ;;  %v195_v18 = vperm.slane %v1184_v10, 0  ;;  %vm251_vm2 = vcmask 57344   ;;  %s778_s11 = sshll.u32 %s1040_s4, 1  ;;  %v325_v38 = vld [vmem:[%s1330_s5 + $0x8] sm:$0xff]  ;;  %s1040_s4 = sphi %s1206_s4, %s144_s4   ;;  %v1036_v16 = vphi %v137_v16, %v704_v16   ;;  %v1032_v17 = vphi %v138_v17, %v702_v17  }
  0x1e   : > { %772 = vmatpush.xpose.msk.msra.mxu2 %vm200_vm1, %v1137_v0  ;;  %774 = vmatpush.xpose.msk.msra.mxu3 %vm200_vm1, %v1139_v1  ;;  %s322_s14 = scalar_lea.vmem %s1325_s0, %s778_s11  ;;  %v324_v39 = vld [vmem:[%s1330_s5] sm:$0xff]  ;;  %v381_v41 = vld [vmem:[#allocation7 + $0x18] sm:$0xff]  ;;  %v379_v44 = vld [vmem:[#allocation7 + $0x8] sm:$0xff]  ;;  %vm274_vm3 = vcmask 64512   ;;  %vm331_vm4 = vcmask 1041409   ;;  %s144_s4 = sadd.s32 1, %s1040_s4  }
  0x1f   : > { %164 = vmatpush.msra.mxu0 %v1174_v8  ;;  %187 = vmatpush.msra.mxu1 %v1154_v4  ;;  %v1254_v40 = vld [vmem:[%s322_s14] sm:$0x3]  ;;  %v477_v43 = vld [vmem:[#allocation7 + $0x38] sm:$0xff]  ;;  %v475_v46 = vld [vmem:[#allocation7 + $0x28] sm:$0xff]  ;;  %s731_s14 = scalar_lea.vmem [#allocation11], %s778_s11  ;;  %p141_p0 = scmp.ge.s32.totalorder %s144_s4, 8  }
  0x20   : > { %v380_v42 = vld [vmem:[#allocation7 + $0x10] sm:$0xff]  ;;  %v378_v53 = vld [vmem:[#allocation7] sm:$0xff]  ;;  %v327_v55 = vld [vmem:[#allocation5 + $0x8] sm:$0xff]  ;;  %s740_s10 = sshll.u32 (%p141_p0), %s1338_s13, 4  ;;  %s1049_s16 = smov (%p141_p0), [#allocation11]   ;;  %s741_s10 = int_to_ptr.hbm [resolvable:$true] %s740_s10 }
  0x21   : > { %165 = vmatpush.msra.mxu0 %v1169_v7  ;;  %188 = vmatpush.msra.mxu1 %v1149_v3  ;;  %v476_v45 = vld [vmem:[#allocation7 + $0x30] sm:$0xff]  ;;  %v474_v54 = vld [vmem:[#allocation7 + $0x20] sm:$0xff]  ;;  %v432_v56 = vld [vmem:[#allocation5 + $0x18] sm:$0xff]  ;;  %s738_s17 = sshll.u32 (%p141_p0), %s1049_s16, 4  ;;  %s1050_s11 = smov (%p141_p0), 32   ;;  %s739_s17 = int_to_ptr.vmem [resolvable:$true] %s738_s17 }
  0x22   : > { %316 = vmatpush.msrb.mxu3 %v1139_v1  ;;  %293 = vmatpush.msrb.mxu2 %v1137_v0  ;;  %v326_v57 = vld [vmem:[#allocation5] sm:$0xff]  ;;  %v529_v58 = vld [vmem:[#allocation5 + $0x28] sm:$0xff]  ;;  %v608_v59 = vld [vmem:[#allocation5 + $0x38] sm:$0xff]  ;;  %s1051_s18 = smov (%p141_p0), 2  }
  0x23   : > { %166 = vmatpush.msra.mxu0 %v1164_v6  ;;  %189 = vmatpush.msra.mxu1 %v1144_v2  ;;  %v431_v60 = vld [vmem:[#allocation5 + $0x10] sm:$0xff]  ;;  %v528_v61 = vld [vmem:[#allocation5 + $0x20] sm:$0xff]  ;;  %v784_v63 = vld [vmem:[%s1330_s5 + $0x18] sm:$0xff] }
  0x24   : > { %770 = vmatmul.msk.f32.vlgmr.msra.gmra.mxu0 %vm147_vm0, %v1032_v17  ;;  %771 = vmatmul.msk.f32.vlgmr.msra.gmra.mxu1 %vm147_vm0, %v1036_v16  ;;  %v607_v62 = vld [vmem:[#allocation5 + $0x30] sm:$0xff] }
  0x25   : > { %372 = vmatpush.msrb.mxu1 %v325_v38  ;;  %349 = vmatpush.msrb.mxu0 %v327_v55 }
  0x27   : > { %373 = vmatpush.msrb.mxu1 %v324_v39  ;;  %350 = vmatpush.msrb.mxu0 %v326_v57  ;;  %v838_v39 = vld [vmem:[%s1333_s8] ss:$0 sm:$0xff]  ;;  %v841_v57 = vld [vmem:[%s1333_s8 + $0x3] ss:$0 sm:$0xff] }
  0x29   : > { %490 = vmatpush.msra.mxu1 %v477_v43  ;;  %467 = vmatpush.msra.mxu0 %v784_v63 }
  0x2b   : > { %491 = vmatpush.msra.mxu1 %v476_v45 }
  0x2c   : > { %780 = vmatmul.msk.f32.vlgmr.msrb.gmra.mxu1 %vm200_vm1, %v1254_v40 }
  0x2d   : > { %492 = vmatpush.msra.mxu1 %v475_v46 }
  0x2f   : > { %493 = vmatpush.msra.mxu1 %v474_v54 }
  0x31   : > { %623 = vmatpush.msrb.mxu1 %v608_v59 }
  0x33   : > { %624 = vmatpush.msrb.mxu1 %v607_v62 }
  0x34   : > { %787 = vmatmul.msk.f32.vlgmr.msra.gmra.mxu1 %vm147_vm0, %v1036_v16 }
  0xa1   : > { %v168_v19 = vpop.f32.mrf.mxu0  ;;  %v191_v20 = vpop.f32.mrf.mxu1 }
  0xa2   : > { %v192_v21 = vadd.f32 %v191_v20, %v168_v19  ;;  %v791_v19 = vld [vmem:[%s1330_s5 + $0x28] sm:$0xff]  ;;  %v797_v20 = vld [vmem:[%s1330_s5 + $0x38] sm:$0xff] }
  0xa4   : > { %v197_v22 = vadd.f32 %v195_v18, %v192_v21  ;;  %v783_v18 = vld [vmem:[%s1330_s5 + $0x10] sm:$0xff]  ;;  %v790_v21 = vld [vmem:[%s1330_s5 + $0x20] sm:$0xff] }
  0xa5   : > { %468 = vmatpush.msra.mxu0 %v783_v18 }
  0xa6   : > { %773 = vmatmul.msk.f32.vlgmr.msra.gmra.mxu2 %vm200_vm1, %v197_v22  ;;  %v199_v23 = vrot.slane %v197_v22, 1  ;;  %v796_v22 = vld [vmem:[%s1330_s5 + $0x30] sm:$0xff] }
  0xa7   : > { %394 = vmatpush.msra.mxu2 %v381_v41 }
  0xa8   : > { %775 = vmatmul.msk.f32.vlgmr.msra.gmra.mxu3 %vm200_vm1, %v199_v23 }
  0xa9   : > { %395 = vmatpush.msra.mxu2 %v380_v42  ;;  %447 = vmatpush.msra.mxu3 %v432_v56 }
  0xab   : > { %396 = vmatpush.msra.mxu2 %v379_v44  ;;  %448 = vmatpush.msra.mxu3 %v431_v60 }
  0xad   : > { %397 = vmatpush.msra.mxu2 %v378_v53 }
 0x129   : > { %v223_v26 = vpop.f32.mrf.mxu2 }
 0x12a   : > { %v252_v27 = vsel %vm251_vm2, %v223_v26, -inf }
 0x12b   : > { %v248_v24 = vpop.f32.mrf.mxu3 }
 0x12c   : > { %v255_v25 = vsel %vm251_vm2, %v248_v24, -inf }
 0x12d   : > { %256 = vmax.xlane.f32.xlu0 %v255_v25 }
 0x135   : > { %253 = vmax.xlane.f32.xlu0 %v252_v27  ;;  %v574_v27 = vld [vmem:[#allocation7 + $0x58] sm:$0xff] }
 0x1a0   : > { %v257_v28 = vpop.xlane.xlu0 %256 }
 0x1a1   : > { %v259_v29 = vsub.f32 %v248_v24, %v257_v28  ;;  %v653_v28 = vld [vmem:[#allocation7 + $0x78] sm:$0xff] }
 0x1a3   : > { %v262_v30 = vmul.f32 1.442695, %v259_v29  ;;  %v573_v29 = vld [vmem:[#allocation7 + $0x50] sm:$0xff] }
 0x1a5   : > { %842 = vpow2.f32 %v262_v30  ;;  %v652_v30 = vld [vmem:[#allocation7 + $0x70] sm:$0xff] }
 0x1a8   : > { %v254_v31 = vpop.xlane.xlu0 %253 }
 0x1a9   : > { %v258_v32 = vsub.f32 %v223_v26, %v254_v31  ;;  %v572_v31 = vld [vmem:[#allocation7 + $0x48] sm:$0xff] }
 0x1ab   : > { %v843_v33 = vpop.eup %842  ;;  %v260_v34 = vmul.f32 1.442695, %v258_v32  ;;  %v651_v32 = vld [vmem:[#allocation7 + $0x68] sm:$0xff] }
 0x1ac   : > { %v267_v35 = vsel %vm251_vm2, %v843_v33, 0.0 }
 0x1ad   : > { %844 = vpow2.f32 %v260_v34  ;;  %268 = vadd.xlane.f32.xlu1 %v267_v35  ;;  %v650_v34 = vld [vmem:[#allocation7 + $0x60] sm:$0xff] }
 0x1b3   : > { %v845_v36 = vpop.eup %844 }
 0x1b4   : > { %v264_v37 = vsel %vm251_vm2, %v845_v36, 0.0  ;;  %vm732_vm2 = vcmask 254976  }
 0x1b5   : > { %265 = vadd.xlane.f32.xlu1 %v264_v37 }
 0x220   : > { %v269_v47 = vpop.xlane.xlu1 %268 }
 0x221   : > { %846 = vrcp.f32 %v269_v47 }
 0x227   : > { %v847_v48 = vpop.eup %846 }
 0x228   : > { %v266_v49 = vpop.xlane.xlu1 %265  ;;  %v273_v50 = vmul.f32 %v847_v48, %v843_v33  ;;  %v571_v33 = vld [vmem:[#allocation7 + $0x40] sm:$0xff] }
 0x229   : > { %848 = vrcp.f32 %v266_v49 }
 0x22a   : > { %777 = vmatmul.msk.f32.vlgmr.msrb.gmra.mxu3 %vm274_vm3, %v273_v50 }
 0x22b   : > { %564 = vmatpush.msrb.mxu3 %v791_v19 }
 0x22d   : > { %565 = vmatpush.msrb.mxu3 %v790_v21 }
 0x22f   : > { %v849_v51 = vpop.eup %848 }
 0x230   : > { %v272_v52 = vmul.f32 %v849_v51, %v845_v36  ;;  %v375_v36 = vpop.f32.mrf.mxu1 }
 0x232   : > { %776 = vmatmul.msk.f32.vlgmr.msrb.gmra.mxu2 %vm274_vm3, %v272_v52 }
 0x233   : > { %544 = vmatpush.msrb.mxu2 %v529_v58 }
 0x235   : > { %545 = vmatpush.msrb.mxu2 %v528_v61 }
 0x238   : > { %v495_v47 = vpop.f32.mrf.mxu1 }
 0x23a   : > { %781 = vmatmul.msk.f32.vlgmr.msra.gmra.mxu2 %vm147_vm0, %v1036_v16 }
 0x23b   : > { %643 = vmatpush.msra.mxu2 %v797_v20 }
 0x23d   : > { %644 = vmatpush.msra.mxu2 %v796_v22 }
 0x2ad   : > { %v318_v23 = vpop.f32.mrf.mxu3 }
 0x2ae   : > { %v330_v24 = vrot.slane %v318_v23, 7 }
 0x2b5   : > { %v295_v25 = vpop.f32.mrf.mxu2 }
 0x2b6   : > { %v332_v26 = vsel %vm331_vm4, %v330_v24, %v295_v25  ;;  %v840_v24 = vld [vmem:[%s1333_s8 + $0x2] ss:$0 sm:$0xff] }
 0x2b7   : > { %779 = vmatmul.msk.f32.vlgmr.msrb.gmra.mxu0 %vm200_vm1, %v332_v26  ;;  %785 = vmatmul.msk.f32.vlgmr.msra.gmra.mxu3 %vm200_vm1, %v332_v26 }
 0x2b8   : > { %792 = vmatmul.msk.f32.vlgmr.msrb.gmra.mxu2 %vm200_vm1, %v332_v26  ;;  %798 = vmatmul.msk.f32.vlgmr.msrb.gmra.mxu1 %vm200_vm1, %v332_v26 }
 0x2b9   : > { %587 = vmatpush.msrb.mxu0 %v574_v27  ;;  %666 = vmatpush.msra.mxu3 %v653_v28 }
 0x2bb   : > { %588 = vmatpush.msrb.mxu0 %v573_v29  ;;  %667 = vmatpush.msra.mxu3 %v652_v30 }
 0x2bd   : > { %589 = vmatpush.msrb.mxu0 %v572_v31  ;;  %668 = vmatpush.msra.mxu3 %v651_v32  ;;  %v399_v35 = vpop.f32.mrf.mxu2 }
 0x2bf   : > { %786 = vmatmul.msk.f32.vlgmr.msra.gmra.mxu0 %vm200_vm1, %v1254_v40  ;;  %793 = vmatmul.msk.f32.vlgmr.msrb.gmra.mxu3 %vm200_vm1, %v1254_v40 }
 0x2c0   : > { %799 = vmatmul.msk.f32.vlgmr.msra.gmra.mxu2 %vm200_vm1, %v1254_v40  ;;  %590 = vmatpush.msrb.mxu0 %v571_v33 }
 0x2c1   : > { %669 = vmatpush.msra.mxu3 %v650_v34 }
 0x2c2   : > { %723 = vmatpush.msra.mxu0 %v1192_v14 }
 0x2c4   : > { %724 = vmatpush.msra.mxu0 %v1190_v13 }
 0x2c6   : > { %725 = vmatpush.msra.mxu0 %v1188_v12 }
 0x2c7   : > { %794 = vmatmul.msk.f32.vlgmr.msrb.gmra.mxu0 %vm147_vm0, %v1036_v16  ;;  %800 = vmatmul.msk.f32.vlgmr.msra.gmra.mxu3 %vm147_vm0, %v1036_v16  ;;  %v839_v16 = vld [vmem:[%s1333_s8 + $0x1] ss:$0 sm:$0xff] }
 0x2c8   : > { %726 = vmatpush.msra.mxu0 %v1186_v11 }
 0x334   : > { %v352_v37 = vpop.f32.mrf.mxu0 }
 0x335   : > { %v376_v38 = vadd.f32 %v375_v36, %v352_v37  ;;  %v626_v55 = vpop.f32.mrf.mxu1 }
 0x337   : > { %v402_v40 = vadd.f32 %v399_v35, %v376_v38 }
 0x339   : > { %v407_v41 = vadd.f32 %v838_v39, %v402_v40 }
 0x33a   : > { %v450_v42 = vpop.f32.mrf.mxu3 }
 0x33b   : > { %v782_v43 = vmul.f32 -1.442695, %v407_v41  ;;  %v547_v44 = vpop.f32.mrf.mxu2 }
 0x33c   : > { %v470_v45 = vpop.f32.mrf.mxu0 }
 0x33d   : > { %850 = vpow2.f32 %v782_v43  ;;  %v471_v46 = vadd.f32 %v470_v45, %v450_v42 }
 0x33f   : > { %v498_v48 = vadd.f32 %v495_v47, %v471_v46 }
 0x341   : > { %v504_v49 = vadd.f32 %v839_v16, %v498_v48 }
 0x342   : > { %v567_v50 = vpop.f32.mrf.mxu3 }
 0x343   : > { %v851_v51 = vpop.eup %850  ;;  %v789_v52 = vmul.f32 -1.442695, %v504_v49  ;;  %v646_v54 = vpop.f32.mrf.mxu2  ;;  %v568_v63 = vadd.f32 %v567_v50, %v547_v44 }
 0x344   : > { %v411_v53 = vadd.f32 1.0, %v851_v51  ;;  %v647_v56 = vadd.f32 %v646_v54, %v626_v55  ;;  %v592_v19 = vpop.f32.mrf.mxu0 }
 0x345   : > { %852 = vpow2.f32 %v789_v52  ;;  %v595_v23 = vadd.f32 %v592_v19, %v568_v63 }
 0x346   : > { %854 = vrcp.f32 %v411_v53  ;;  %v423_v30 = vand.u32 2147483648, %v411_v53  ;;  %vm417_vm6 = vweird.f32 %v411_v53  ;;  %v421_v33 = vand.u32 2147483647, %v411_v53 }
 0x347   : > { %v601_v27 = vadd.f32 %v840_v24, %v595_v23 }
 0x348   : > { %v424_v39 = vor.u32 1.1754944e-38, %v423_v30  ;;  %vm422_vm10 = vcmp.eq.f32.partialorder %v421_v33, 8.507059e+37 }
 0x34a   : > { %v671_v58 = vpop.f32.mrf.mxu3 }
 0x34b   : > { %v853_v59 = vpop.eup %852  ;;  %v674_v60 = vadd.f32 %v671_v58, %v647_v56  ;;  %v706_v58 = vperm.slane %v1194_v15, 0 }
 0x34c   : > { %v855_v61 = vpop.eup %854  ;;  %v508_v62 = vadd.f32 1.0, %v853_v59 }
 0x34d   : > { %v413_v18 = vmul.f32 %v855_v61, %v411_v53  ;;  %v680_v20 = vadd.f32 %v841_v57, %v674_v60  ;;  %vm418_vm5 = vweird.f32 %v855_v61 }
 0x34e   : > { %856 = vrcp.f32 %v508_v62  ;;  %v520_v34 = vand.u32 2147483648, %v508_v62  ;;  %vm419_vm7 = vmor %vm417_vm6, %vm418_vm5  ;;  %v518_v38 = vand.u32 2147483647, %v508_v62  ;;  %vm514_vm9 = vweird.f32 %v508_v62 }
 0x34f   : > { %v414_v21 = vsub.f32 1.0, %v413_v18  ;;  %v802_v22 = vmul.f32 -1.442695, %v680_v20 }
 0x350   : > { %v521_v42 = vor.u32 1.1754944e-38, %v520_v34  ;;  %vm519_vm12 = vcmp.eq.f32.partialorder %v518_v38, 8.507059e+37 }
 0x351   : > { %v415_v25 = vmul.f32 %v855_v61, %v414_v21  ;;  %858 = vpow2.f32 %v802_v22 }
 0x352   : > { %860 = vtanh.f32 %v601_v27 }
 0x353   : > { %v416_v29 = vadd.f32 %v855_v61, %v415_v25 }
 0x354   : > { %v857_v26 = vpop.eup %856 }
 0x355   : > { %v510_v28 = vmul.f32 %v857_v26, %v508_v62  ;;  %v420_v37 = vsel %vm419_vm7, %v855_v61, %v416_v29  ;;  %vm515_vm8 = vweird.f32 %v857_v26 }
 0x356   : > { %v425_v41 = vsel %vm422_vm10, %v424_v39, %v420_v37  ;;  %vm516_vm11 = vmor %vm514_vm9, %vm515_vm8 }
 0x357   : > { %v859_v31 = vpop.eup %858  ;;  %v511_v32 = vsub.f32 1.0, %v510_v28 }
 0x358   : > { %v684_v35 = vadd.f32 1.0, %v859_v31  ;;  %v861_v44 = vpop.eup %860 }
 0x359   : > { %v512_v36 = vmul.f32 %v857_v26, %v511_v32  ;;  %v701_v46 = vmul.f32 %v861_v44, %v425_v41 }
 0x35a   : > { %862 = vrcp.f32 %v684_v35  ;;  %v696_v50 = vand.u32 2147483648, %v684_v35  ;;  %v694_v52 = vand.u32 2147483647, %v684_v35  ;;  %vm690_vm14 = vweird.f32 %v684_v35 }
 0x35b   : > { %v513_v40 = vadd.f32 %v857_v26, %v512_v36 }
 0x35c   : > { %v697_v54 = vor.u32 1.1754944e-38, %v696_v50  ;;  %vm695_vm1 = vcmp.eq.f32.partialorder %v694_v52, 8.507059e+37 }
 0x35d   : > { %v517_v43 = vsel %vm516_vm11, %v857_v26, %v513_v40 }
 0x35e   : > { %v522_v45 = vsel %vm519_vm12, %v521_v42, %v517_v43 }
 0x35f   : > { %v700_v16 = vmul.f32 %v1032_v17, %v522_v45 }
 0x360   : > { %v863_v47 = vpop.eup %862 }
 0x361   : > { %v686_v48 = vmul.f32 %v863_v47, %v684_v35  ;;  %v702_v17 = vadd.f32 %v701_v46, %v700_v16   ;;  %vm691_vm13 = vweird.f32 %v863_v47 }
 0x362   : > { %vm692_vm15 = vmor %vm690_vm14, %vm691_vm13 }
 0x363   : > { %v687_v49 = vsub.f32 1.0, %v686_v48  ;;  %864 = vtanh.f32 %v702_v17  ;;  %803 = vmatmul.msk.f32.vlgmr.msra.gmra.mxu0 %vm147_vm0, %v702_v17 }
 0x365   : > { %v688_v51 = vmul.f32 %v863_v47, %v687_v49 }
 0x367   : > { %v689_v53 = vadd.f32 %v863_v47, %v688_v51 }
 0x369   : > { %v865_v55 = vpop.eup %864  ;;  %v693_v56 = vsel %vm692_vm15, %v863_v47, %v689_v53 }
 0x36a   : > { %v698_v57 = vsel %vm695_vm1, %v697_v54, %v693_v56 }
 0x36b   : > { %v704_v16 = vmul.f32 %v865_v55, %v698_v57  }
 0x3df   :  { %143 = sbr.rel (!%p141_p0) target bundleno = 29 (0x1d), region = 113 }
 0x3e0   : > { %v728_v59 = vpop.f32.mrf.mxu0 }
 0x3e1   : > { %v729_v60 = vadd.f32 %v728_v59, %v706_v58 }
 0x3e3   : > { %733 = vst.msk [vmem:[%s731_s14] sm:$0x3] %vm732_vm2, %v729_v60 }
 0x3e4   :  { %746 = dma.vmem_to_hbm [thread:$0]  %s739_s17, 256, %s741_s10, [#allocation4], %s1050_s11, %s1050_s11, %s1051_s18  }
 0x3e5   :  { %1028 = dma.done.wait [#allocation4], 256  }
 0x3e6   :  { %1029 = vsyncadd [#allocation4], 4294967040 }
 0x3e7   :  { %751 = vsyncpa [#allocation3], 1 }
 0x3e8   :  { %752 = vsyncpa [#allocation6], 1 }
 0x3e9   :  { %753 = vsyncpa [#allocation9], 1 }
 0x3ea   :  { %754 = vsyncpa [#allocation4], 1 }

</bundles_post_ra>
